<compile_context>
chip_gen: v5e
topology: v5e:2x2
jax: 0.10.0
libtpu: 0.0.40
codegen_flags: <defaults>
</compile_context>

<pallas_src>
import functools

import jax
import jax.numpy as jnp
from jax.experimental import pallas as pl
from jax.experimental.pallas import tpu as pltpu

_MIB = 1024 * 1024
_SLACK_BYTES = 4 * _MIB          # headroom for compiler-internal scratch
_CHUNK_TEMP_BYTES = 2 * _MIB     # target size of the per-chunk f32 product temp
_MAX_CHUNKS = 32                 # cap on the statically unrolled chunk loop
_SUBLANES = {4: 8, 2: 16, 1: 32}


def _round_up(x: int, m: int) -> int:
    return (x + m - 1) // m * m


def _round_down(x: int, m: int) -> int:
    return x // m * m


@functools.lru_cache(maxsize=None)
def _vmem_capacity_bytes() -> int:
    try:
        return int(pltpu.get_tpu_info().vmem_capacity_bytes)
    except Exception:
        return 64 * _MIB          # conservative (v7x-sized) fallback


def _classifier_kernel(attn_ref, feat_ref, w_ref, b_ref, out_ref, acc_ref,
                       *, seq_len, s_tile, chunk, mask_tail):
    # attn_ref: (Bt, St)     f32 attention weights
    # feat_ref: (Bt, St, F)  features (native dtype)
    # w_ref:    (F, Cp)      linear weight, pre-transposed, lane-padded (native dtype)
    # b_ref:    (1, Cp)      f32 bias, lane-padded
    # out_ref:  (Bt, Cp)
    # acc_ref:  (Bt, F) f32  accumulator, resident across the S grid axis
    s_idx = pl.program_id(1)

    @pl.when(s_idx == 0)
    def _init():
        acc_ref[...] = jnp.zeros_like(acc_ref)

    # Chunked reduction over this S tile: the f32 product temp stays at
    # (Bt, chunk, F); the full (Bt, St, F) tile is never upcast/materialized.
    for c0 in range(0, s_tile, chunk):
        c1 = min(c0 + chunk, s_tile)
        a = attn_ref[:, c0:c1].astype(jnp.float32)[:, :, None]      # (Bt, c, 1)
        f = feat_ref[:, c0:c1, :].astype(jnp.float32)               # (Bt, c, F)
        prod = a * f
        if mask_tail:
            # Only the last S tile can be ragged; stale rows of the boundary
            # block (possibly NaN/Inf) are selected away, not multiplied.
            pos = (s_idx * s_tile + c0
                   + jax.lax.broadcasted_iota(
                       jnp.int32, (1, c1 - c0, prod.shape[-1]), 1))
            prod = jnp.where(pos < seq_len, prod, 0.0)
        acc_ref[...] += jnp.sum(prod, axis=1)                       # (Bt, F) f32

    @pl.when(s_idx == pl.num_programs(1) - 1)
    def _finalize():
        pooled = acc_ref[...]                                        # (Bt, F) f32
        # Feed the resident weight to the MXU in its native dtype; accumulate
        # the matmul in f32 (no F x Cp f32 upcast of the weight).
        out = jnp.dot(pooled.astype(w_ref.dtype), w_ref[...],
                      preferred_element_type=jnp.float32)            # (Bt, Cp)
        out = out + b_ref[...]
        # TODO(synk): training-mode nn.Dropout not implemented; eval-mode
        # dropout is the identity, which is what this kernel computes.
        out_ref[...] = out.astype(out_ref.dtype)


def _choose_tiles(B, S, F, Cp, feat_dtype, w_dtype, out_dtype, bt, st, chunk):
    """Pick (Bt, St, chunk, vmem_limit) obeying Mosaic block rules and a
    generation-aware VMEM budget."""
    feat_isz = jnp.dtype(feat_dtype).itemsize
    w_isz = jnp.dtype(w_dtype).itemsize
    out_isz = jnp.dtype(out_dtype).itemsize
    sub_s = _SUBLANES.get(feat_isz, 8)                  # sublane multiple, S tiles
    sub_b = _SUBLANES.get(min(feat_isz, out_isz), 8)    # sublane multiple, B tiles

    phys = _vmem_capacity_bytes()
    # ~96 MiB on 128 MiB parts (v5e/v6e), ~48 MiB on 64 MiB parts (v7x).
    base_limit = max(32 * _MIB, min(phys * 3 // 4, 100 * _MIB))

    # ----- B tile -----
    if bt is None:
        if B <= 128:
            bt = B                                       # full extent: always legal
        else:
            # Keep the per-chunk f32 product (bt * sub_s * F * 4) modest while
            # giving the epilogue matmul a decent number of MXU rows.
            cap = max(sub_b, _round_down(_CHUNK_TEMP_BYTES // (sub_s * F * 4), sub_b))
            bt = min(128, cap)
    else:
        bt = max(1, min(int(bt), B))
        if bt < B and bt % sub_b:
            bt = max(sub_b, _round_down(bt, sub_b))

    weight_bytes = 2 * F * Cp * w_isz     # resident, but Pallas double-buffers inputs
    bias_bytes = 2 * Cp * 4

    def st_budget(bt_):
        temp = 3 * max(_CHUNK_TEMP_BYTES, bt_ * sub_s * F * 4)
        fixed = (weight_bytes + bias_bytes + temp + _SLACK_BYTES
                 + bt_ * F * 4                    # f32 accumulator scratch
                 + 2 * bt_ * Cp * out_isz)        # double-buffered output block
        per_row = 2 * bt_ * (F * feat_isz + 4)    # features + attention, x2 buffers
        return max(0, base_limit - fixed) // per_row

    # Shrink the batch tile before ever over-committing VMEM on the S tile.
    st_target = min(S, 128)
    while bt > sub_b and st_budget(bt) < st_target:
        bt = max(sub_b, _round_down(bt // 2, sub_b))

    # ----- inner chunk (static, sublane-aligned) -----
    if chunk is None:
        chunk = max(sub_s, _round_down(_CHUNK_TEMP_BYTES // (bt * F * 4), sub_s))
    chunk = max(1, int(chunk))

    # ----- S tile -----
    if st is None:
        st_max = st_budget(bt)
        if st_max >= S or S <= 128:
            st = S                                       # full extent: always legal
        else:
            # Partial-extent S tiles must be lane-dense (multiple of 128, the
            # attention block's minor dim); cap the static chunk-loop length.
            st = max(128, _round_down(st_max, 128))
            st = min(st, max(128, _round_down(_MAX_CHUNKS * chunk, 128)))
    else:
        st = max(1, min(int(st), S))
        if st < S and st % 128:
            st = min(S, max(128, _round_down(st, 128)))

    # VMEM limit: generation default, bumped if our own estimate exceeds it
    # (never above ~92% of physical VMEM).
    chunk_eff = min(chunk, st)
    est = (weight_bytes + bias_bytes + 3 * bt * chunk_eff * F * 4 + _SLACK_BYTES
           + bt * F * 4 + 2 * bt * Cp * out_isz
           + st * 2 * bt * (F * feat_isz + 4))
    vmem_limit = min(int(phys * 0.92), max(base_limit, est))
    return bt, st, chunk, int(vmem_limit)


@functools.partial(jax.jit, static_argnames=("bt", "st", "chunk"))
def classifier_forward(features, p_attns, weight, bias, *, bt=None, st=None, chunk=None):
    """Eval-mode forward of `Classifier`.

    features: (B, S, F); p_attns: reshapeable to (B, S); weight: (C, F);
    bias: (C,).  Returns (B, C)."""
    B, S, F = features.shape
    C = weight.shape[0]
    out_dtype = jnp.result_type(features.dtype, weight.dtype)
    Cp = _round_up(C, 128)        # lane-dense output / weight minor dim

    bt_, st_, chunk_, vmem_limit = _choose_tiles(
        B, S, F, Cp, features.dtype, weight.dtype, out_dtype, bt, st, chunk)

    # Attention stays a tiny 2-D f32 stream (lane-dense DMA); the f32 multiply
    # matches PyTorch promotion even for low-precision features.
    attn2d = p_attns.reshape(B, S).astype(jnp.float32)
    # NOTE: features are NOT padded or copied -- partial B / S tiles are
    # handled by Pallas boundary blocks plus in-kernel masking of the S tail.
    w_t = jnp.pad(weight.T, ((0, 0), (0, Cp - C)))                     # (F, Cp)
    b2d = jnp.pad(bias.astype(jnp.float32), (0, Cp - C)).reshape(1, Cp)

    grid = (pl.cdiv(B, bt_), pl.cdiv(S, st_))
    kernel = functools.partial(
        _classifier_kernel, seq_len=S, s_tile=st_, chunk=chunk_,
        mask_tail=(S % st_ != 0))

    out = pl.pallas_call(
        kernel,
        out_shape=jax.ShapeDtypeStruct((B, Cp), out_dtype),
        grid_spec=pltpu.PrefetchScalarGridSpec(
            num_scalar_prefetch=0,
            grid=grid,
            in_specs=[
                pl.BlockSpec((bt_, st_), lambda b, s: (b, s)),         # attention
                pl.BlockSpec((bt_, st_, F), lambda b, s: (b, s, 0)),   # features
                pl.BlockSpec((F, Cp), lambda b, s: (0, 0)),            # resident weight
                pl.BlockSpec((1, Cp), lambda b, s: (0, 0)),            # resident bias
            ],
            out_specs=pl.BlockSpec((bt_, Cp), lambda b, s: (b, 0)),
            scratch_shapes=[pltpu.VMEM((bt_, F), jnp.float32)],
        ),
        compiler_params=pltpu.CompilerParams(
            # B tiles shard across TensorCores (megacore / v7x); S is the
            # sequential reduction axis.
            # TODO(synk): when there is a single B tile on v7x one TensorCore
            # idles; a cross-core S split (CMEM combine) is not implemented.
            dimension_semantics=("parallel", "arbitrary"),
            vmem_limit_bytes=vmem_limit,
        ),
    )(attn2d, features, w_t, b2d)

    return out[:, :C]


if __name__ == "__main__":
    def make_case(key, B, S, F, C):
        kf, ka, kw, kb = jax.random.split(key, 4)
        features = jax.random.normal(kf, (B, S, F), dtype=jnp.float32)
        p_attns = jax.nn.softmax(
            jax.random.normal(ka, (B, S), dtype=jnp.float32), axis=-1)
        weight = jax.random.normal(kw, (C, F), dtype=jnp.float32) / jnp.sqrt(F)
        bias = jax.random.normal(kb, (C,), dtype=jnp.float32) * 0.01
        return features, p_attns, weight, bias

    def ref_forward(features, p_attns, weight, bias):
        pooled = jnp.sum(p_attns[:, :, None] * features, axis=-2)
        return pooled @ weight.T + bias

    k1, k2, k3 = jax.random.split(jax.random.PRNGKey(0), 3)

    # Case 1: tiny single-tile path matching the module's (B, S, F) -> (B, C) contract.
    f1, a1, w1, b1 = make_case(k1, 2, 8, 32, 16)
    out1 = jax.block_until_ready(classifier_forward(f1, a1, w1, b1))
    assert out1.shape == (2, 16)
    assert jnp.allclose(out1, ref_forward(f1, a1, w1, b1), atol=1e-4, rtol=1e-4), "case 1 mismatch"

    # Case 2: multi-S-tile accumulator path + in-kernel chunked reduction.
    f2, a2, w2, b2 = make_case(k2, 4, 256, 128, 10)
    out2 = jax.block_until_ready(classifier_forward(f2, a2, w2, b2, st=128, chunk=32))
    assert out2.shape == (4, 10)
    assert jnp.allclose(out2, ref_forward(f2, a2, w2, b2), atol=1e-4, rtol=1e-4), "case 2 mismatch"

    # Case 3: ragged S tail (masked in-kernel, no feature padding) + partial B tile + C padding.
    f3, a3, w3, b3 = make_case(k3, 11, 200, 64, 7)
    out3 = jax.block_until_ready(classifier_forward(f3, a3, w3, b3, bt=8, st=128, chunk=16))
    assert out3.shape == (11, 7)
    assert jnp.allclose(out3, ref_forward(f3, a3, w3, b3), atol=1e-4, rtol=1e-4), "case 3 mismatch"

    print("KERNEL_OK")
</pallas_src>

<mosaic_0001>
module attributes {stable_mosaic.version = 11 : i64} {
  func.func @_classifier_kernel(%arg0: i32, %arg1: i32, %arg2: memref<2x8xf32, #tpu.memory_space<vmem>>, %arg3: memref<2x8x32xf32, #tpu.memory_space<vmem>>, %arg4: memref<32x128xf32, #tpu.memory_space<vmem>>, %arg5: memref<1x128xf32, #tpu.memory_space<vmem>>, %arg6: memref<2x128xf32, #tpu.memory_space<vmem>>, %arg7: memref<2x32xf32, #tpu.memory_space<vmem>>) attributes {dimension_semantics = [#tpu.dimension_semantics<parallel>, #tpu.dimension_semantics<arbitrary>], iteration_bounds = array<i64: 1, 1>, scalar_prefetch = 0 : i64, scratch_operands = 1 : i64, tpu.core_type = #tpu.core_type<tc>, window_params = [{transform_indices = @transform_0, window_bounds = array<i64: 2, 8>}, {transform_indices = @transform_1, window_bounds = array<i64: 2, 8, 32>}, {pipeline_mode = #tpu.pipeline_mode<synchronous>, transform_indices = @transform_2, window_bounds = array<i64: 32, 128>}, {pipeline_mode = #tpu.pipeline_mode<synchronous>, transform_indices = @transform_3, window_bounds = array<i64: 1, 128>}, {transform_indices = @transform_4, window_bounds = array<i64: 2, 128>}]} {
    %c0_i32 = arith.constant 0 : i32
    %0 = arith.cmpi eq, %arg1, %c0_i32 : i32
    %1 = arith.extui %0 : i1 to i32
    %c0_i32_0 = arith.constant 0 : i32
    %2 = arith.cmpi ne, %1, %c0_i32_0 : i32
    scf.if %2 {
      %cst_11 = arith.constant 0.000000e+00 : f32
      %15 = vector.broadcast %cst_11 : f32 to vector<2x32xf32>
      %c0_12 = arith.constant 0 : index
      %c0_13 = arith.constant 0 : index
      %16 = vector.load %arg7[%c0_12, %c0_13] : memref<2x32xf32, #tpu.memory_space<vmem>>, vector<2x32xf32>
      tpu.vector_store %arg7[%c0_12, %c0_13], %15 {strides = array<i32>} : memref<2x32xf32, #tpu.memory_space<vmem>>, vector<2x32xf32>,
    } else {
    }
    %c0 = arith.constant 0 : index
    %c0_1 = arith.constant 0 : index
    %3 = vector.load %arg2[%c0, %c0_1] : memref<2x8xf32, #tpu.memory_space<vmem>>, vector<2x8xf32>
    %4 = vector.shape_cast %3 : vector<2x8xf32> to vector<2x8x1xf32>
    %c0_2 = arith.constant 0 : index
    %c0_3 = arith.constant 0 : index
    %c0_4 = arith.constant 0 : index
    %5 = vector.load %arg3[%c0_2, %c0_3, %c0_4] : memref<2x8x32xf32, #tpu.memory_space<vmem>>, vector<2x8x32xf32>
    %6 = vector.broadcast %4 : vector<2x8x1xf32> to vector<2x8x32xf32>
    %7 = arith.mulf %6, %5 : vector<2x8x32xf32>
    %c0_5 = arith.constant 0 : index
    %c0_6 = arith.constant 0 : index
    %8 = vector.load %arg7[%c0_5, %c0_6] : memref<2x32xf32, #tpu.memory_space<vmem>>, vector<2x32xf32>
    %cst = arith.constant dense<0.000000e+00> : vector<2x32xf32>
    %9 = vector.multi_reduction <add>, %7, %cst [1] : vector<2x8x32xf32> to vector<2x32xf32>
    %10 = arith.addf %8, %9 : vector<2x32xf32>
    %c0_7 = arith.constant 0 : index
    %c0_8 = arith.constant 0 : index
    %11 = vector.load %arg7[%c0_7, %c0_8] : memref<2x32xf32, #tpu.memory_space<vmem>>, vector<2x32xf32>
    tpu.vector_store %arg7[%c0_7, %c0_8], %10 {strides = array<i32>} : memref<2x32xf32, #tpu.memory_space<vmem>>, vector<2x32xf32>,
    %c0_i32_9 = arith.constant 0 : i32
    %12 = arith.cmpi eq, %arg1, %c0_i32_9 : i32
    %13 = arith.extui %12 : i1 to i32
    %c0_i32_10 = arith.constant 0 : i32
    %14 = arith.cmpi ne, %13, %c0_i32_10 : i32
    scf.if %14 {
      %c0_11 = arith.constant 0 : index
      %c0_12 = arith.constant 0 : index
      %15 = vector.load %arg7[%c0_11, %c0_12] : memref<2x32xf32, #tpu.memory_space<vmem>>, vector<2x32xf32>
      %c0_13 = arith.constant 0 : index
      %c0_14 = arith.constant 0 : index
      %16 = vector.load %arg4[%c0_13, %c0_14] : memref<32x128xf32, #tpu.memory_space<vmem>>, vector<32x128xf32>
      %cst_15 = arith.constant dense<0.000000e+00> : vector<2x128xf32>
      %17 = tpu.matmul %15, %16, %cst_15 {dimension_numbers = #tpu.dot_dimension_numbers<[1], [0], [0], [1], [0, 0, 1, 1], [], []>} : vector<2x32xf32>, vector<32x128xf32>, vector<2x128xf32> -> vector<2x128xf32>
      %c0_16 = arith.constant 0 : index
      %c0_17 = arith.constant 0 : index
      %18 = vector.load %arg5[%c0_16, %c0_17] : memref<1x128xf32, #tpu.memory_space<vmem>>, vector<1x128xf32>
      %19 = vector.broadcast %18 : vector<1x128xf32> to vector<2x128xf32>
      %20 = arith.addf %17, %19 : vector<2x128xf32>
      %c0_18 = arith.constant 0 : index
      %c0_19 = arith.constant 0 : index
      %21 = vector.load %arg6[%c0_18, %c0_19] : memref<2x128xf32, #tpu.memory_space<vmem>>, vector<2x128xf32>
      tpu.vector_store %arg6[%c0_18, %c0_19], %20 {strides = array<i32>} : memref<2x128xf32, #tpu.memory_space<vmem>>, vector<2x128xf32>,
    } else {
    }
    return
  }
  func.func @transform_0(%arg0: i32, %arg1: i32) -> (i32, i32) {
    %c0_i32 = arith.constant 0 : i32
    return %arg0, %arg1 : i32, i32
  }
  func.func @transform_1(%arg0: i32, %arg1: i32) -> (i32, i32, i32) {
    %c0_i32 = arith.constant 0 : i32
    %c0_i32_0 = arith.constant 0 : i32
    return %arg0, %arg1, %c0_i32 : i32, i32, i32
  }
  func.func @transform_2(%arg0: i32, %arg1: i32) -> (i32, i32) {
    %c0_i32 = arith.constant 0 : i32
    %c0_i32_0 = arith.constant 0 : i32
    %c0_i32_1 = arith.constant 0 : i32
    return %c0_i32, %c0_i32_0 : i32, i32
  }
  func.func @transform_3(%arg0: i32, %arg1: i32) -> (i32, i32) {
    %c0_i32 = arith.constant 0 : i32
    %c0_i32_0 = arith.constant 0 : i32
    %c0_i32_1 = arith.constant 0 : i32
    return %c0_i32, %c0_i32_0 : i32, i32
  }
  func.func @transform_4(%arg0: i32, %arg1: i32) -> (i32, i32) {
    %c0_i32 = arith.constant 0 : i32
    %c0_i32_0 = arith.constant 0 : i32
    return %arg0, %c0_i32 : i32, i32
  }
}

</mosaic_0001>

<bundles_post_ra>
// kernel: classifier_forward.1
= control target key start
LH: loop header
LB: loop body
LE: loop exit
PB: predicated region body
PF: predicated region fallthrough
CT: control target
= control target key end

     0   :  { %v26_v0 = vlaneseq  ;;  %s209_s0 = inlined_call_operand.vmem [shape: f32[2,8], index: 0, kind: input, shape index: {}]   ;;  %s210_s1 = inlined_call_operand.vmem [shape: f32[2,8,32], index: 1, kind: input, shape index: {}]   ;;  %s211_s2 = inlined_call_operand.vmem [shape: f32[32,128], index: 2, kind: input, shape index: {}]   ;;  %s212_s3 = inlined_call_operand.vmem [shape: f32[1,128], index: 3, kind: input, shape index: {}]   ;;  %s213_s4 = inlined_call_operand.hbm [shape: f32[2,128], index: 4, kind: output, shape index: {}]  }
   0x1   :  { %9 = vsyncpa [#allocation4], 0  ;;  %v24_v2 = vld [vmem:[%s209_s0] sm:$0x3]  ;;  %v74_v5 = vld [vmem:[%s211_s2 + $0x18] sm:$0xff]  ;;  %vm22_vm0 = vcmask 254976  }
   0x2   :  { %v27_v1 = vshrl.u32 %v26_v0, 7  ;;  %v25_v3 = vperm.slane %v24_v2, 0  ;;  %v32_v4 = vperm.slane %v24_v2, 1  ;;  %v73_v6 = vld [vmem:[%s211_s2 + $0x10] sm:$0xff]  ;;  %94 = vmatpush.msra.mxu0 %v74_v5  ;;  %v150_v7 = vmov 0.0   ;;  %v72_v8 = vld [vmem:[%s211_s2 + $0x8] sm:$0xff] }
   0x3   :  { %23 = vst.msk [vmem:[#allocation2] sm:$0x3] %vm22_vm0, %v150_v7  ;;  %v71_v9 = vld [vmem:[%s211_s2] sm:$0xff]  ;;  %vm44_vm1 = vcmask 261120   ;;  %v40_v15 = vld [vmem:[%s210_s1 + $0x8] sm:$0xff]  ;;  %vm61_vm2 = vcmask 1041409  }
   0x4   :  { %122 = vset.pattern.permute.xlu0 %v27_v1  ;;  %95 = vmatpush.msra.mxu0 %v73_v6  ;;  %v39_v10 = vld [vmem:[%s210_s1] sm:$0xff]  ;;  %s151_s28 = smov [#allocation3]   ;;  %s110_s6 = sshll.u32 %s213_s4, 4  ;;  %s111_s6 = int_to_ptr.hbm [resolvable:$true] %s110_s6 }
   0x5   :  { %v123_v34 = vld [vmem:[%s212_s3] ss:$0 sm:$0xff]  ;;  %s108_s29 = sshll.u32 %s151_s28, 4  ;;  %s109_s29 = int_to_ptr.vmem [resolvable:$true] %s108_s29 }
   0x6   :  { %96 = vmatpush.msra.mxu0 %v72_v8 }
   0x8   :  { %97 = vmatpush.msra.mxu0 %v71_v9 }
   0xa   :  { %v43_v28 = vld [vmem:[#allocation2] sm:$0x3] }
   0xc   :  { %30 = vperm.xlu0 %122, %v25_v3  }
  0x14   :  { %37 = vperm.xlu0 %122, %v32_v4  }
  0x7e   :  { %v31_v11 = vpop.permute.xlu0 %30 }
  0x7f   :  { %v41_v12 = vmul.f32 %v39_v10, %v31_v11 }
  0x81   :  { %v45_v13 = vsel %vm44_vm1, %v41_v12, 0.0 }
  0x82   :  { %v46_v14 = vrot.slane %v45_v13, 4 }
  0x84   :  { %v47_v16 = vadd.f32 %v46_v14, %v45_v13 }
  0x86   :  { %v38_v17 = vpop.permute.xlu0 %37  ;;  %v48_v19 = vrot.slane %v47_v16, 2 }
  0x87   :  { %v42_v18 = vmul.f32 %v40_v15, %v38_v17 }
  0x88   :  { %v49_v22 = vadd.f32 %v48_v19, %v47_v16 }
  0x89   :  { %v52_v20 = vsel %vm44_vm1, %v42_v18, 0.0 }
  0x8a   :  { %v53_v21 = vrot.slane %v52_v20, 4  ;;  %v50_v25 = vrot.slane %v49_v22, 1 }
  0x8c   :  { %v54_v23 = vadd.f32 %v53_v21, %v52_v20  ;;  %v51_v29 = vadd.f32 %v50_v25, %v49_v22 }
  0x8e   :  { %v55_v24 = vrot.slane %v54_v23, 2 }
  0x90   :  { %v56_v26 = vadd.f32 %v55_v24, %v54_v23 }
  0x92   :  { %v57_v27 = vrot.slane %v56_v26, 1 }
  0x94   :  { %v58_v30 = vadd.f32 %v57_v27, %v56_v26 }
  0x96   :  { %v62_v31 = vsel %vm61_vm2, %v58_v30, %v51_v29 }
  0x97   :  { %v64_v32 = vadd.f32 %v62_v31, %v43_v28 }
  0x99   :  { %66 = vst.msk [vmem:[#allocation2] sm:$0x3] %vm22_vm0, %v64_v32 }
  0xa0   :  { %v70_v33 = vld [vmem:[#allocation2] sm:$0x3] }
  0xa1   :  { %119 = vmatmul.msk.f32.vlgmr.msra.gmra.mxu0 %vm44_vm1, %v70_v33 }
 0x11e   :  { %v99_v35 = vpop.f32.mrf.mxu0 }
 0x11f   :  { %v100_v36 = vadd.f32 %v123_v34, %v99_v35 }
 0x121   :  { %102 = vst [vmem:[#allocation3] sm:$0x3] %v100_v36 }
 0x122   :  { %113 = dma.vmem_to_hbm [thread:$0]  %s109_s29, 32, %s111_s6, [#allocation4]  }
 0x123   :  { %148 = dma.done.wait [#allocation4], 32  }
 0x124   :  { %149 = vsyncadd [#allocation4], 4294967264 }
 0x125   :  { %118 = vsyncpa [#allocation4], 1 }

</bundles_post_ra>
